<compile_context>
chip_gen: v7x
topology: tpu7x:2x2x1
jax: 0.10.0
libtpu: 0.0.40
codegen_flags: <defaults>
</compile_context>

<pallas_src>
import functools

import jax
import jax.numpy as jnp
from jax import lax
from jax.experimental import pallas as pl
from jax.experimental.pallas import tpu as pltpu


def _stable_softplus(x):
    # log1p(exp(x)) without overflow for large x (== log1p(exp(x)) exactly for x <= 0).
    return jnp.maximum(x, 0.0) + jnp.log1p(jnp.exp(-jnp.abs(x)))


# ----------------------------------------------------------------------------
# Kernel A: weight sampling + KL-regularizer reductions.
# Parameters arrive already in the conv LHS layout (OC, KH*KW*Cin). The sampled weight
# is emitted twice: f32 (returned to caller) and pre-cast compute dtype (consumed by
# kernel B with no per-step re-cast).
# ----------------------------------------------------------------------------
def _sample_kernel(mu_ref, rho_ref, eps_ref, w32_ref, wc_ref,
                   rsm_ref, rss_ref, rls_ref):
    mu = mu_ref[...]
    sigma = _stable_softplus(rho_ref[...])            # softplus(rho)
    w = mu + sigma * eps_ref[...]
    w32_ref[...] = w
    wc_ref[...] = w.astype(wc_ref.dtype)
    rsm_ref[0, 0] = jnp.sum(mu * mu)                  # reg_square_mu
    rss_ref[0, 0] = jnp.sum(sigma * sigma)            # reg_square_sigma
    rls_ref[0, 0] = jnp.sum(jnp.log(sigma))           # reg_log_sigma


def sample_weights(mu2d, rho2d, eps2d, compute_dtype):
    """mu2d/rho2d/eps2d: (OC, KH*KW*Cin) float32."""
    # TODO(synk): for very large parameter tensors (v7x 32 MiB scoped VMEM), tile over
    # row blocks with pl.when-init/finalized partial sums, and run the elementwise math
    # on a lane-dense flattened view (small Cin wastes lane width in this layout).
    r, c = mu2d.shape
    vspec = pl.BlockSpec((r, c), lambda: (0, 0))
    sspec = pl.BlockSpec(memory_space=pltpu.SMEM)
    w32, wc, rsm, rss, rls = pl.pallas_call(
        _sample_kernel,
        out_shape=(
            jax.ShapeDtypeStruct((r, c), jnp.float32),
            jax.ShapeDtypeStruct((r, c), compute_dtype),
            jax.ShapeDtypeStruct((1, 1), jnp.float32),
            jax.ShapeDtypeStruct((1, 1), jnp.float32),
            jax.ShapeDtypeStruct((1, 1), jnp.float32),
        ),
        in_specs=[vspec, vspec, vspec],
        out_specs=(vspec, vspec, sspec, sspec, sspec),
    )(mu2d, rho2d, eps2d)
    return w32, wc, rsm[0, 0], rss[0, 0], rls[0, 0]


# ----------------------------------------------------------------------------
# Kernel B: fused-im2col conv, NB batch elements per grid step, one MXU matmul.
#   x_ref:       (NB, Cin, FLATP)    padded image, spatially flattened (compute dtype)
#   w_ref:       (OC, KH*KW*Cin)     sampled weight, conv LHS layout (compute dtype)
#   b_ref:       (OC, 1)             sampled bias (f32)
#   o_ref:       (NB, OC, OH*WP)     channel-major, lane-dense "wrapped" output (f32)
#   patches_ref: (KH*KW*Cin, NB*L)   VMEM scratch holding all shifted windows
# ----------------------------------------------------------------------------
def _conv_kernel(x_ref, w_ref, b_ref, o_ref, patches_ref, *, kh, kw, cin, wp,
                 stride, dilation):
    nb = o_ref.shape[0]
    l = o_ref.shape[2]                                # OH * WP lanes (lane-dense)
    # Stage every tap's shifted window into VMEM scratch (fused im2col):
    # rows are tap-major (t*Cin + c), lanes are batch-major (b*L + m).
    for b in range(nb):                               # static unroll
        for i in range(kh):
            for j in range(kw):
                t = i * kw + j
                off = (i * wp + j) * dilation         # static lane offset of this tap
                if stride == 1:
                    xs = x_ref[b, :, pl.ds(off, l)]
                else:
                    # TODO(synk): lane-strided reads may lower to slow gathers; for
                    # production stride>1 configs pre-decimate columns in the wrapper.
                    xs = x_ref[b, :, pl.ds(off, l, stride=stride)]
                patches_ref[pl.ds(t * cin, cin), pl.ds(b * l, l)] = xs
    # One MXU matmul with K = KH*KW*Cin, f32 accumulation.
    acc = jnp.dot(w_ref[...], patches_ref[...],
                  preferred_element_type=jnp.float32)  # (OC, NB*L)
    bias = b_ref[...]                                  # (OC, 1) f32
    for b in range(nb):
        o_ref[b, :, :] = (acc[:, b * l:(b + 1) * l] + bias).astype(o_ref.dtype)


# ----------------------------------------------------------------------------
# BayesianConv2d forward (groups=1, bias=True, non-frozen)
# ----------------------------------------------------------------------------
@functools.partial(jax.jit, static_argnames=("kernel_size", "stride", "padding",
                                             "dilation", "use_bf16", "batch_block"))
def bayesian_conv2d_forward(x, weight_mu, weight_rho, bias_mu, bias_rho,
                            eps_w, eps_b, *, kernel_size, stride=1, padding=0,
                            dilation=1, use_bf16=True, batch_block=1):
    oc, cin, kh, kw = weight_mu.shape
    assert (kh, kw) == tuple(kernel_size)
    n, c, h, w_in = x.shape
    assert c == cin, "groups != 1 not supported"      # TODO(synk): grouped conv
    assert n % batch_block == 0
    t = kh * kw
    compute_dtype = jnp.bfloat16 if use_bf16 else jnp.float32

    # --- Kernel A: sample w + regularizers, emitted in the conv LHS layout ---
    def conv_layout(p):                               # (OC,Cin,KH,KW) -> (OC, KH*KW*Cin)
        return p.transpose(0, 2, 3, 1).reshape(oc, t * cin)

    w32, w_conv, reg_sq_mu, reg_sq_sigma, reg_log_sigma = sample_weights(
        conv_layout(weight_mu), conv_layout(weight_rho), conv_layout(eps_w),
        compute_dtype)

    # --- sample bias (tiny; plain JAX glue) ----------------------------------
    b = bias_mu + _stable_softplus(bias_rho) * eps_b

    # --- Kernel B: fused-im2col conv, single MXU matmul per grid step --------
    hp, wp = h + 2 * padding, w_in + 2 * padding
    oh = (hp - dilation * (kh - 1) - 1) // stride + 1
    ow = (wp - dilation * (kw - 1) - 1) // stride + 1
    l = oh * wp                                       # lane extent per image (wrapped)
    max_off = dilation * ((kh - 1) * wp + (kw - 1))
    flat_needed = stride * (l - 1) + max_off + 1
    flatp = -(-max(flat_needed, hp * wp) // 128) * 128

    # TODO(synk): this pad/cast pre-pass is an extra HBM round trip of the activation;
    # for production shapes fuse it into the pallas_call operand (allow_input_fusion)
    # or take a pre-padded compute-dtype input.
    xp = jnp.pad(x, ((0, 0), (0, 0), (padding, padding), (padding, padding)))
    xflat = xp.reshape(n, cin, hp * wp)               # free reshape, no im2col in HBM
    xflat = jnp.pad(xflat, ((0, 0), (0, 0), (0, flatp - hp * wp)))
    xflat = xflat.astype(compute_dtype)

    nb = batch_block
    ywrap = pl.pallas_call(
        functools.partial(_conv_kernel, kh=kh, kw=kw, cin=cin, wp=wp,
                          stride=stride, dilation=dilation),
        out_shape=jax.ShapeDtypeStruct((n, oc, l), jnp.float32),
        grid_spec=pltpu.PrefetchScalarGridSpec(
            num_scalar_prefetch=0,
            grid=(n // nb,),                          # parallel over batch blocks
            in_specs=[
                pl.BlockSpec((nb, cin, flatp), lambda i: (i, 0, 0)),
                pl.BlockSpec((oc, t * cin), lambda i: (0, 0)),   # resident bf16 weight
                pl.BlockSpec((oc, 1), lambda i: (0, 0)),         # resident f32 bias
            ],
            out_specs=pl.BlockSpec((nb, oc, l), lambda i: (i, 0, 0)),
            scratch_shapes=[pltpu.VMEM((t * cin, nb * l), compute_dtype)],
        ),
        compiler_params=pltpu.CompilerParams(
            dimension_semantics=("parallel",),
            vmem_limit_bytes=32 * 1024 * 1024,
        ),
        # TODO(synk): for large OH*WP / Cin on v7x (64 MiB physical VMEM), add an OH-tile
        # grid axis ("arbitrary", last) with an f32 VMEM accumulator, and single-buffer
        # the resident weight/bias specs (pipeline_mode=pl.Buffered(1)) to free VMEM.
    )(xflat, w_conv, b.reshape(oc, 1))

    # (N, OC, OH, WP)[..., :OW] -> NCHW: free reshape + cheap right-edge slice,
    # no HBM transpose of the activations.
    y = ywrap.reshape(n, oc, oh, wp)[:, :, :, :ow]

    w_sampled = w32.reshape(oc, kh, kw, cin).transpose(0, 3, 1, 2)
    return y, (reg_sq_mu, reg_sq_sigma, reg_log_sigma), w_sampled, b


if __name__ == "__main__":
    # Module config (groups=1, bias=True, freeze=False)
    in_channels, out_channels = 4, 8
    kernel_size = (3, 3)
    stride, padding, dilation = 1, 1, 1
    posterior_mu_init, posterior_rho_init = 0.0, -6.0

    key = jax.random.PRNGKey(0)
    k_x, k_wmu, k_wrho, k_bmu, k_brho, k_epsw, k_epsb = jax.random.split(key, 7)

    x = jax.random.normal(k_x, (2, in_channels, 16, 16), jnp.float32)
    wshape = (out_channels, in_channels, *kernel_size)
    weight_mu = posterior_mu_init + 0.1 * jax.random.normal(k_wmu, wshape, jnp.float32)
    weight_rho = posterior_rho_init + 0.1 * jax.random.normal(k_wrho, wshape, jnp.float32)
    bias_mu = posterior_mu_init + 0.1 * jax.random.normal(k_bmu, (out_channels,), jnp.float32)
    bias_rho = posterior_rho_init + 0.1 * jax.random.normal(k_brho, (out_channels,), jnp.float32)
    # eps ~ N(0,1) draws (eps_w.data.normal_() in the module) — fixed here for determinism
    eps_w = jax.random.normal(k_epsw, wshape, jnp.float32)
    eps_b = jax.random.normal(k_epsb, (out_channels,), jnp.float32)

    y, regs, w_sampled, b_sampled = bayesian_conv2d_forward(
        x, weight_mu, weight_rho, bias_mu, bias_rho, eps_w, eps_b,
        kernel_size=kernel_size, stride=stride, padding=padding, dilation=dilation)
    jax.block_until_ready((y, regs, w_sampled, b_sampled))

    assert y.shape == (2, out_channels, 16, 16)

    # Batch-blocked path (NB=2 -> whole batch in one grid step) must agree.
    y_nb2, _, _, _ = bayesian_conv2d_forward(
        x, weight_mu, weight_rho, bias_mu, bias_rho, eps_w, eps_b,
        kernel_size=kernel_size, stride=stride, padding=padding, dilation=dilation,
        batch_block=2)
    jax.block_until_ready(y_nb2)
    assert jnp.allclose(y, y_nb2, atol=1e-5, rtol=1e-5)

    # Reference 1: bf16-consistent conv (same operand rounding as the kernel's MXU path).
    x_q = x.astype(jnp.bfloat16).astype(jnp.float32)
    w_q = w_sampled.astype(jnp.bfloat16).astype(jnp.float32)
    y_ref = lax.conv_general_dilated(
        x_q, w_q, window_strides=(stride, stride),
        padding=[(padding, padding), (padding, padding)],
        rhs_dilation=(dilation, dilation),
        dimension_numbers=("NCHW", "OIHW", "NCHW"),
    ) + b_sampled.reshape(1, -1, 1, 1)
    assert jnp.allclose(y, y_ref, atol=1e-3, rtol=1e-3), float(jnp.max(jnp.abs(y - y_ref)))

    # Reference 2: full-f32 conv (loose check; only bf16 operand rounding differs).
    y_ref32 = lax.conv_general_dilated(
        x, w_sampled, window_strides=(stride, stride),
        padding=[(padding, padding), (padding, padding)],
        rhs_dilation=(dilation, dilation),
        dimension_numbers=("NCHW", "OIHW", "NCHW"),
    ) + b_sampled.reshape(1, -1, 1, 1)
    assert jnp.allclose(y, y_ref32, atol=1e-1, rtol=1e-1)

    # Regularizer checks (semantics of torch.log1p(torch.exp(rho)))
    sigma_ref = jnp.log1p(jnp.exp(weight_rho))
    assert jnp.allclose(regs[0], jnp.sum(weight_mu ** 2), rtol=1e-4, atol=1e-5)
    assert jnp.allclose(regs[1], jnp.sum(sigma_ref ** 2), rtol=1e-4, atol=1e-8)
    assert jnp.allclose(regs[2], jnp.sum(jnp.log(sigma_ref)), rtol=1e-4, atol=1e-4)

    # Sampled-weight semantics check (w = mu + softplus(rho) * eps)
    assert jnp.allclose(w_sampled, weight_mu + sigma_ref * eps_w, rtol=1e-5, atol=1e-6)

    print("KERNEL_OK")
</pallas_src>

<mosaic_0001>
module attributes {stable_mosaic.version = 11 : i64} {
  func.func @_sample_kernel(%arg0: memref<8x36xf32, #tpu.memory_space<vmem>>, %arg1: memref<8x36xf32, #tpu.memory_space<vmem>>, %arg2: memref<8x36xf32, #tpu.memory_space<vmem>>, %arg3: memref<8x36xf32, #tpu.memory_space<vmem>>, %arg4: memref<8x36xbf16, #tpu.memory_space<vmem>>, %arg5: memref<1x1xf32, #tpu.memory_space<smem>>, %arg6: memref<1x1xf32, #tpu.memory_space<smem>>, %arg7: memref<1x1xf32, #tpu.memory_space<smem>>) attributes {dimension_semantics = [], scalar_prefetch = 0 : i64, scratch_operands = 0 : i64, tpu.core_type = #tpu.core_type<tc>} {
    %c0 = arith.constant 0 : index
    %c0_0 = arith.constant 0 : index
    %0 = vector.load %arg0[%c0, %c0_0] : memref<8x36xf32, #tpu.memory_space<vmem>>, vector<8x36xf32>
    %c0_1 = arith.constant 0 : index
    %c0_2 = arith.constant 0 : index
    %1 = vector.load %arg1[%c0_1, %c0_2] : memref<8x36xf32, #tpu.memory_space<vmem>>, vector<8x36xf32>
    %cst = arith.constant 0.000000e+00 : f32
    %2 = vector.broadcast %cst : f32 to vector<8x36xf32>
    %3 = arith.maximumf %1, %2 : vector<8x36xf32>
    %4 = math.absf %1 : vector<8x36xf32>
    %cst_3 = arith.constant 0.000000e+00 : f32
    %5 = vector.broadcast %cst_3 : f32 to vector<8x36xf32>
    %6 = arith.subf %5, %4 : vector<8x36xf32>
    %7 = math.exp %6 : vector<8x36xf32>
    %8 = math.log1p %7 : vector<8x36xf32>
    %9 = arith.addf %3, %8 : vector<8x36xf32>
    %c0_4 = arith.constant 0 : index
    %c0_5 = arith.constant 0 : index
    %10 = vector.load %arg2[%c0_4, %c0_5] : memref<8x36xf32, #tpu.memory_space<vmem>>, vector<8x36xf32>
    %11 = arith.mulf %9, %10 : vector<8x36xf32>
    %12 = arith.addf %0, %11 : vector<8x36xf32>
    %c0_6 = arith.constant 0 : index
    %c0_7 = arith.constant 0 : index
    %13 = vector.load %arg3[%c0_6, %c0_7] : memref<8x36xf32, #tpu.memory_space<vmem>>, vector<8x36xf32>
    tpu.vector_store %arg3[%c0_6, %c0_7], %12 {strides = array<i32>} : memref<8x36xf32, #tpu.memory_space<vmem>>, vector<8x36xf32>,
    %14 = arith.truncf %12 : vector<8x36xf32> to vector<8x36xbf16>
    %c0_8 = arith.constant 0 : index
    %c0_9 = arith.constant 0 : index
    %15 = vector.load %arg4[%c0_8, %c0_9] : memref<8x36xbf16, #tpu.memory_space<vmem>>, vector<8x36xbf16>
    tpu.vector_store %arg4[%c0_8, %c0_9], %14 {strides = array<i32>} : memref<8x36xbf16, #tpu.memory_space<vmem>>, vector<8x36xbf16>,
    %16 = arith.mulf %0, %0 : vector<8x36xf32>
    %17 = vector.shape_cast %16 : vector<8x36xf32> to vector<1x8x36xf32>
    %cst_10 = arith.constant dense<0.000000e+00> : vector<1xf32>
    %18 = vector.multi_reduction <add>, %17, %cst_10 [1, 2] : vector<1x8x36xf32> to vector<1xf32>
    %19 = vector.shape_cast %18 : vector<1xf32> to vector<1x1x1xf32>
    %20 = vector.extract %19[0, 0, 0] : f32 from vector<1x1x1xf32>
    %c0_11 = arith.constant 0 : index
    %c0_12 = arith.constant 0 : index
    %21 = memref.load %arg5[%c0_11, %c0_12] : memref<1x1xf32, #tpu.memory_space<smem>>
    memref.store %20, %arg5[%c0_11, %c0_12] : memref<1x1xf32, #tpu.memory_space<smem>>
    %22 = arith.mulf %9, %9 : vector<8x36xf32>
    %23 = vector.shape_cast %22 : vector<8x36xf32> to vector<1x8x36xf32>
    %cst_13 = arith.constant dense<0.000000e+00> : vector<1xf32>
    %24 = vector.multi_reduction <add>, %23, %cst_13 [1, 2] : vector<1x8x36xf32> to vector<1xf32>
    %25 = vector.shape_cast %24 : vector<1xf32> to vector<1x1x1xf32>
    %26 = vector.extract %25[0, 0, 0] : f32 from vector<1x1x1xf32>
    %c0_14 = arith.constant 0 : index
    %c0_15 = arith.constant 0 : index
    %27 = memref.load %arg6[%c0_14, %c0_15] : memref<1x1xf32, #tpu.memory_space<smem>>
    memref.store %26, %arg6[%c0_14, %c0_15] : memref<1x1xf32, #tpu.memory_space<smem>>
    %28 = math.log %9 : vector<8x36xf32>
    %29 = vector.shape_cast %28 : vector<8x36xf32> to vector<1x8x36xf32>
    %cst_16 = arith.constant dense<0.000000e+00> : vector<1xf32>
    %30 = vector.multi_reduction <add>, %29, %cst_16 [1, 2] : vector<1x8x36xf32> to vector<1xf32>
    %31 = vector.shape_cast %30 : vector<1xf32> to vector<1x1x1xf32>
    %32 = vector.extract %31[0, 0, 0] : f32 from vector<1x1x1xf32>
    %c0_17 = arith.constant 0 : index
    %c0_18 = arith.constant 0 : index
    %33 = memref.load %arg7[%c0_17, %c0_18] : memref<1x1xf32, #tpu.memory_space<smem>>
    memref.store %32, %arg7[%c0_17, %c0_18] : memref<1x1xf32, #tpu.memory_space<smem>>
    return
  }
}

module attributes {stable_mosaic.version = 11 : i64} {
  func.func @_conv_kernel(%arg0: i32, %arg1: memref<1x4x384xbf16, #tpu.memory_space<vmem>>, %arg2: memref<8x36xbf16, #tpu.memory_space<vmem>>, %arg3: memref<8x1xf32, #tpu.memory_space<vmem>>, %arg4: memref<1x8x288xf32, #tpu.memory_space<vmem>>, %arg5: memref<36x288xbf16, #tpu.memory_space<vmem>>) attributes {dimension_semantics = [#tpu.dimension_semantics<parallel>], iteration_bounds = array<i64: 2>, scalar_prefetch = 0 : i64, scratch_operands = 1 : i64, tpu.core_type = #tpu.core_type<tc>, window_params = [{transform_indices = @transform_0, window_bounds = array<i64: 1, 4, 384>}, {pipeline_mode = #tpu.pipeline_mode<synchronous>, transform_indices = @transform_1, window_bounds = array<i64: 8, 36>}, {pipeline_mode = #tpu.pipeline_mode<synchronous>, transform_indices = @transform_2, window_bounds = array<i64: 8, 1>}, {transform_indices = @transform_3, window_bounds = array<i64: 1, 8, 288>}]} {
    %c0 = arith.constant 0 : index
    %c0_0 = arith.constant 0 : index
    %c0_1 = arith.constant 0 : index
    %0 = vector.load %arg1[%c0, %c0_0, %c0_1] : memref<1x4x384xbf16, #tpu.memory_space<vmem>>, vector<1x4x288xbf16>
    %1 = vector.shape_cast %0 : vector<1x4x288xbf16> to vector<4x288xbf16>
    %c0_2 = arith.constant 0 : index
    %c0_3 = arith.constant 0 : index
    %2 = vector.load %arg5[%c0_2, %c0_3] : memref<36x288xbf16, #tpu.memory_space<vmem>>, vector<4x288xbf16>
    tpu.vector_store %arg5[%c0_2, %c0_3], %1 {strides = array<i32>} : memref<36x288xbf16, #tpu.memory_space<vmem>>, vector<4x288xbf16>,
    %c0_4 = arith.constant 0 : index
    %c0_5 = arith.constant 0 : index
    %c1 = arith.constant 1 : index
    %3 = vector.load %arg1[%c0_4, %c0_5, %c1] : memref<1x4x384xbf16, #tpu.memory_space<vmem>>, vector<1x4x288xbf16>
    %4 = vector.shape_cast %3 : vector<1x4x288xbf16> to vector<4x288xbf16>
    %c4 = arith.constant 4 : index
    %c0_6 = arith.constant 0 : index
    %5 = vector.load %arg5[%c4, %c0_6] : memref<36x288xbf16, #tpu.memory_space<vmem>>, vector<4x288xbf16>
    tpu.vector_store %arg5[%c4, %c0_6], %4 {strides = array<i32>} : memref<36x288xbf16, #tpu.memory_space<vmem>>, vector<4x288xbf16>,
    %c0_7 = arith.constant 0 : index
    %c0_8 = arith.constant 0 : index
    %c2 = arith.constant 2 : index
    %6 = vector.load %arg1[%c0_7, %c0_8, %c2] : memref<1x4x384xbf16, #tpu.memory_space<vmem>>, vector<1x4x288xbf16>
    %7 = vector.shape_cast %6 : vector<1x4x288xbf16> to vector<4x288xbf16>
    %c8 = arith.constant 8 : index
    %c0_9 = arith.constant 0 : index
    %8 = vector.load %arg5[%c8, %c0_9] : memref<36x288xbf16, #tpu.memory_space<vmem>>, vector<4x288xbf16>
    tpu.vector_store %arg5[%c8, %c0_9], %7 {strides = array<i32>} : memref<36x288xbf16, #tpu.memory_space<vmem>>, vector<4x288xbf16>,
    %c0_10 = arith.constant 0 : index
    %c0_11 = arith.constant 0 : index
    %c18 = arith.constant 18 : index
    %9 = vector.load %arg1[%c0_10, %c0_11, %c18] : memref<1x4x384xbf16, #tpu.memory_space<vmem>>, vector<1x4x288xbf16>
    %10 = vector.shape_cast %9 : vector<1x4x288xbf16> to vector<4x288xbf16>
    %c12 = arith.constant 12 : index
    %c0_12 = arith.constant 0 : index
    %11 = vector.load %arg5[%c12, %c0_12] : memref<36x288xbf16, #tpu.memory_space<vmem>>, vector<4x288xbf16>
    tpu.vector_store %arg5[%c12, %c0_12], %10 {strides = array<i32>} : memref<36x288xbf16, #tpu.memory_space<vmem>>, vector<4x288xbf16>,
    %c0_13 = arith.constant 0 : index
    %c0_14 = arith.constant 0 : index
    %c19 = arith.constant 19 : index
    %12 = vector.load %arg1[%c0_13, %c0_14, %c19] : memref<1x4x384xbf16, #tpu.memory_space<vmem>>, vector<1x4x288xbf16>
    %13 = vector.shape_cast %12 : vector<1x4x288xbf16> to vector<4x288xbf16>
    %c16 = arith.constant 16 : index
    %c0_15 = arith.constant 0 : index
    %14 = vector.load %arg5[%c16, %c0_15] : memref<36x288xbf16, #tpu.memory_space<vmem>>, vector<4x288xbf16>
    tpu.vector_store %arg5[%c16, %c0_15], %13 {strides = array<i32>} : memref<36x288xbf16, #tpu.memory_space<vmem>>, vector<4x288xbf16>,
    %c0_16 = arith.constant 0 : index
    %c0_17 = arith.constant 0 : index
    %c20 = arith.constant 20 : index
    %15 = vector.load %arg1[%c0_16, %c0_17, %c20] : memref<1x4x384xbf16, #tpu.memory_space<vmem>>, vector<1x4x288xbf16>
    %16 = vector.shape_cast %15 : vector<1x4x288xbf16> to vector<4x288xbf16>
    %c20_18 = arith.constant 20 : index
    %c0_19 = arith.constant 0 : index
    %17 = vector.load %arg5[%c20_18, %c0_19] : memref<36x288xbf16, #tpu.memory_space<vmem>>, vector<4x288xbf16>
    tpu.vector_store %arg5[%c20_18, %c0_19], %16 {strides = array<i32>} : memref<36x288xbf16, #tpu.memory_space<vmem>>, vector<4x288xbf16>,
    %c0_20 = arith.constant 0 : index
    %c0_21 = arith.constant 0 : index
    %c36 = arith.constant 36 : index
    %18 = vector.load %arg1[%c0_20, %c0_21, %c36] : memref<1x4x384xbf16, #tpu.memory_space<vmem>>, vector<1x4x288xbf16>
    %19 = vector.shape_cast %18 : vector<1x4x288xbf16> to vector<4x288xbf16>
    %c24 = arith.constant 24 : index
    %c0_22 = arith.constant 0 : index
    %20 = vector.load %arg5[%c24, %c0_22] : memref<36x288xbf16, #tpu.memory_space<vmem>>, vector<4x288xbf16>
    tpu.vector_store %arg5[%c24, %c0_22], %19 {strides = array<i32>} : memref<36x288xbf16, #tpu.memory_space<vmem>>, vector<4x288xbf16>,
    %c0_23 = arith.constant 0 : index
    %c0_24 = arith.constant 0 : index
    %c37 = arith.constant 37 : index
    %21 = vector.load %arg1[%c0_23, %c0_24, %c37] : memref<1x4x384xbf16, #tpu.memory_space<vmem>>, vector<1x4x288xbf16>
    %22 = vector.shape_cast %21 : vector<1x4x288xbf16> to vector<4x288xbf16>
    %c28 = arith.constant 28 : index
    %c0_25 = arith.constant 0 : index
    %23 = vector.load %arg5[%c28, %c0_25] : memref<36x288xbf16, #tpu.memory_space<vmem>>, vector<4x288xbf16>
    tpu.vector_store %arg5[%c28, %c0_25], %22 {strides = array<i32>} : memref<36x288xbf16, #tpu.memory_space<vmem>>, vector<4x288xbf16>,
    %c0_26 = arith.constant 0 : index
    %c0_27 = arith.constant 0 : index
    %c38 = arith.constant 38 : index
    %24 = vector.load %arg1[%c0_26, %c0_27, %c38] : memref<1x4x384xbf16, #tpu.memory_space<vmem>>, vector<1x4x288xbf16>
    %25 = vector.shape_cast %24 : vector<1x4x288xbf16> to vector<4x288xbf16>
    %c32 = arith.constant 32 : index
    %c0_28 = arith.constant 0 : index
    %26 = vector.load %arg5[%c32, %c0_28] : memref<36x288xbf16, #tpu.memory_space<vmem>>, vector<4x288xbf16>
    tpu.vector_store %arg5[%c32, %c0_28], %25 {strides = array<i32>} : memref<36x288xbf16, #tpu.memory_space<vmem>>, vector<4x288xbf16>,
    %c0_29 = arith.constant 0 : index
    %c0_30 = arith.constant 0 : index
    %27 = vector.load %arg2[%c0_29, %c0_30] : memref<8x36xbf16, #tpu.memory_space<vmem>>, vector<8x36xbf16>
    %c0_31 = arith.constant 0 : index
    %c0_32 = arith.constant 0 : index
    %28 = vector.load %arg5[%c0_31, %c0_32] : memref<36x288xbf16, #tpu.memory_space<vmem>>, vector<36x288xbf16>
    %cst = arith.constant dense<0.000000e+00> : vector<8x288xf32>
    %29 = tpu.matmul %27, %28, %cst {dimension_numbers = #tpu.dot_dimension_numbers<[1], [0], [0], [1], [0, 0, 1, 1], [], []>} : vector<8x36xbf16>, vector<36x288xbf16>, vector<8x288xf32> -> vector<8x288xf32>
    %c0_33 = arith.constant 0 : index
    %c0_34 = arith.constant 0 : index
    %30 = vector.load %arg3[%c0_33, %c0_34] : memref<8x1xf32, #tpu.memory_space<vmem>>, vector<8x1xf32>
    %31 = vector.broadcast %30 : vector<8x1xf32> to vector<8x288xf32>
    %32 = arith.addf %29, %31 : vector<8x288xf32>
    %c0_35 = arith.constant 0 : index
    %c0_36 = arith.constant 0 : index
    %c0_37 = arith.constant 0 : index
    %33 = vector.load %arg4[%c0_35, %c0_36, %c0_37] : memref<1x8x288xf32, #tpu.memory_space<vmem>>, vector<1x8x288xf32>
    %34 = vector.shape_cast %33 : vector<1x8x288xf32> to vector<8x288xf32>
    %35 = vector.shape_cast %32 : vector<8x288xf32> to vector<1x8x288xf32>
    tpu.vector_store %arg4[%c0_35, %c0_36, %c0_37], %35 {strides = array<i32>} : memref<1x8x288xf32, #tpu.memory_space<vmem>>, vector<1x8x288xf32>,
    return
  }
  func.func @transform_0(%arg0: i32) -> (i32, i32, i32) {
    %c0_i32 = arith.constant 0 : i32
    %c0_i32_0 = arith.constant 0 : i32
    %c0_i32_1 = arith.constant 0 : i32
    return %arg0, %c0_i32, %c0_i32_0 : i32, i32, i32
  }
  func.func @transform_1(%arg0: i32) -> (i32, i32) {
    %c0_i32 = arith.constant 0 : i32
    %c0_i32_0 = arith.constant 0 : i32
    %c0_i32_1 = arith.constant 0 : i32
    return %c0_i32, %c0_i32_0 : i32, i32
  }
  func.func @transform_2(%arg0: i32) -> (i32, i32) {
    %c0_i32 = arith.constant 0 : i32
    %c0_i32_0 = arith.constant 0 : i32
    %c0_i32_1 = arith.constant 0 : i32
    return %c0_i32, %c0_i32_0 : i32, i32
  }
  func.func @transform_3(%arg0: i32) -> (i32, i32, i32) {
    %c0_i32 = arith.constant 0 : i32
    %c0_i32_0 = arith.constant 0 : i32
    %c0_i32_1 = arith.constant 0 : i32
    return %arg0, %c0_i32, %c0_i32_0 : i32, i32, i32
  }
}

</mosaic_0001>

<bundles_post_ra>
// kernel: bayesian_conv2d_forward.2
= control target key start
LH: loop header
LB: loop body
LE: loop exit
PB: predicated region body
PF: predicated region fallthrough
CT: control target
= control target key end

     0   :  { %13 = vsyncpa [#allocation3], 0  ;;  %vm41_vm0 = vcmask 293888   ;;  %s277_s0 = inlined_call_operand.vmem [shape: f32[8,36], index: 0, kind: input, shape index: {}]   ;;  %s278_s1 = inlined_call_operand.vmem [shape: f32[8,36], index: 1, kind: input, shape index: {}]   ;;  %s279_s2 = inlined_call_operand.vmem [shape: f32[8,36], index: 2, kind: input, shape index: {}]   ;;  %s280_s3 = inlined_call_operand.vmem [shape: f32[8,36], index: 3, kind: output, shape index: {0}]   ;;  %s281_s4 = inlined_call_operand.vmem [shape: bf16[8,36], index: 4, kind: output, shape index: {1}]   ;;  %s282_s5 = inlined_call_operand.hbm [shape: f32[1,1], index: 5, kind: output, shape index: {2}]   ;;  %s283_s6 = inlined_call_operand.hbm [shape: f32[1,1], index: 6, kind: output, shape index: {3}]   ;;  %s284_s7 = inlined_call_operand.hbm [shape: f32[1,1], index: 7, kind: output, shape index: {4}]  }
   0x1   :  { %v21_v0 = vld [vmem:[%s277_s0] sm:$0xff] }
   0x2   :  { %v22_v1 = vld [vmem:[%s278_s1] sm:$0xff]  ;;  %v46_v3 = vmul.f32 %v21_v0, %v21_v0 }
   0x3   :  { %v24_v2 = vand.u32 2147483647, %v22_v1 }
   0x4   :  { %14 = vsyncpa [#allocation5], 0  ;;  %v47_v5 = vsel %vm41_vm0, %v46_v3, 0.0  ;;  %v23_v14 = vmax.f32 %v22_v1, 0.0  ;;  %v38_v17 = vld [vmem:[%s279_s2] sm:$0xff]  ;;  %vm44_vm2 = vcmask 289792  }
   0x5   :  { %v25_v4 = vsub.f32 0.0, %v24_v2  ;;  %48 = vadd.xlane.f32.xlu0 %v47_v5  ;;  %s145_s9 = scalar_lea.hbm %s282_s5, 16 }
   0x6   :  { %p146_p0 = scmp.ne.s32.totalorder %s282_s5, %s145_s9  ;;  %p149_p1 = scmp.lt.u32.totalorder %s145_s9, %s282_s5 }
   0x7   :  { %v26_v6 = vmul.f32 1.442695, %v25_v4 }
   0x8   :  { %p151_p2 = pnand %p149_p1, %p146_p0 }
   0x9   :  { %139 = vpow2.f32 %v26_v6 }
  0x13   :  { %v140_v7 = vpop.eup %139 }
  0x14   :  { %v28_v8 = vadd.f32 1.0, %v140_v7  ;;  %v31_v9 = vmul.f32 -0.5, %v140_v7  ;;  %v34_v11 = vand.u32 2147483647, %v140_v7 }
  0x16   :  { %141 = vlog2.f32 %v28_v8  ;;  %v32_v10 = vadd.f32 1.0, %v31_v9  ;;  %vm35_vm1 = vcmp.lt.f32.partialorder %v34_v11, 0.0004427343 }
  0x18   :  { %v33_v12 = vmul.f32 %v140_v7, %v32_v10 }
  0x20   :  { %v142_v13 = vpop.eup %141 }
  0x21   :  { %v30_v15 = vmul.f32 0.6931472, %v142_v13 }
  0x23   :  { %v36_v16 = vsel %vm35_vm1, %v33_v12, %v30_v15 }
  0x24   :  { %v37_v18 = vadd.f32 %v36_v16, %v23_v14 }
  0x26   :  { %v39_v19 = vmul.f32 %v38_v17, %v37_v18  ;;  %v59_v20 = vmul.f32 %v37_v18, %v37_v18  ;;  %143 = vlog2.f32 %v37_v18 }
  0x28   :  { %v40_v21 = vadd.f32 %v39_v19, %v21_v0  ;;  %v60_v22 = vsel %vm41_vm0, %v59_v20, 0.0 }
  0x29   :  { %61 = vadd.xlane.f32.xlu0 %v60_v22 }
  0x2a   :  { %42 = vst.msk [vmem:[%s280_s3] sm:$0xff] %vm41_vm0, %v40_v21  ;;  %v43_v23 = vpack.c.bf16 %v40_v21, %v40_v21 }
  0x2c   :  { %45 = vst.msk [vmem:[%s281_s4] sm:$0xf] %vm44_vm2, %v43_v23 }
  0x30   :  { %v144_v24 = vpop.eup %143 }
  0x31   :  { %v73_v25 = vmul.f32 0.6931472, %v144_v24 }
  0x33   :  { %v74_v26 = vsel %vm41_vm0, %v73_v25, 0.0 }
  0x34   :  { %75 = vadd.xlane.f32.xlu1 %v74_v26 }
  0x92   :  { %v49_v27 = vpop.xlane.xlu0 %48 }
  0x93   :  { %v50_v28 = vrot.slane %v49_v27, 4 }
  0x95   :  { %v51_v29 = vadd.f32 %v50_v28, %v49_v27 }
  0x97   :  { %v52_v30 = vrot.slane %v51_v29, 2 }
  0x99   :  { %v53_v31 = vadd.f32 %v52_v30, %v51_v29 }
  0x9b   :  { %v54_v32 = vrot.slane %v53_v31, 1 }
  0x9d   :  { %v55_v33 = vadd.f32 %v54_v32, %v53_v31 }
  0x9f   :  { %130 = vpush %v55_v33 }
  0xb6   :  { %v62_v34 = vpop.xlane.xlu0 %61 }
  0xb7   :  { %v63_v35 = vrot.slane %v62_v34, 4 }
  0xb9   :  { %v64_v36 = vadd.f32 %v63_v35, %v62_v34 }
  0xbb   :  { %v65_v37 = vrot.slane %v64_v36, 2 }
  0xbd   :  { %v66_v38 = vadd.f32 %v65_v37, %v64_v36 }
  0xbf   :  { %v67_v39 = vrot.slane %v66_v38, 1 }
  0xc1   :  { %v76_v40 = vpop.xlane.xlu1 %75  ;;  %v68_v41 = vadd.f32 %v67_v39, %v66_v38 }
  0xc2   :  { %v77_v42 = vrot.slane %v76_v40, 4 }
  0xc3   :  { %132 = vpush %v68_v41 }
  0xc4   :  { %v78_v43 = vadd.f32 %v77_v42, %v76_v40 }
  0xc6   :  { %v79_v44 = vrot.slane %v78_v43, 2 }
  0xc8   :  { %v80_v45 = vadd.f32 %v79_v44, %v78_v43 }
  0xca   :  { %v81_v46 = vrot.slane %v80_v45, 1 }
  0xcc   :  { %v82_v47 = vadd.f32 %v81_v46, %v80_v45 }
  0xce   :  { %134 = vpush %v82_v47 }
  0xd0   :  { %s131_s2 = spop %130 }
  0xd1   :  { %58 = sst [smem:[#allocation2]] %s131_s2 }
  0xd2   :  { %154 = shalt.err (!%p151_p2)
}
  0xd3   :  { %s179_s14 = smov [#allocation2]   ;;  %s155_s20 = scalar_lea.hbm %s283_s6, 16 }
  0xd4   :  { %97 = dma.smem_to_hbm %s179_s14, 16, %s282_s5, [#allocation3]  }
  0xd5   :  { %p156_p3 = scmp.ne.s32.totalorder %s283_s6, %s155_s20  ;;  %p159_p4 = scmp.lt.u32.totalorder %s155_s20, %s283_s6 }
  0xd7   :  { %p161_p5 = pnand %p159_p4, %p156_p3 }
  0xf4   :  { %s133_s17 = spop %132 }
  0xf5   :  { %71 = sst [smem:[#allocation4]] %s133_s17 }
  0xf6   :  { %164 = shalt.err (!%p161_p5)
}
  0xf7   :  { %s180_s25 = smov [#allocation4]   ;;  %s165_s28 = scalar_lea.hbm %s284_s7, 16 }
  0xf8   :  { %105 = dma.smem_to_hbm %s180_s25, 16, %s283_s6, [#allocation5]  }
  0xf9   :  { %p166_p6 = scmp.ne.s32.totalorder %s284_s7, %s165_s28  ;;  %p169_p7 = scmp.lt.u32.totalorder %s165_s28, %s284_s7 }
  0xfb   :  { %p171_p8 = pnand %p169_p7, %p166_p6 }
  0xff   :  { %s135_s5 = spop %134 }
 0x100   :  { %85 = sst [smem:[#allocation6]] %s135_s5 }
 0x101   :  { %174 = shalt.err (!%p171_p8)
}
 0x102   :  { %s181_s3 = smov [#allocation6]  }
 0x103   :  { %113 = dma.smem_to_hbm %s181_s3, 16, %s284_s7, [#allocation5]  }
 0x104   :  { %175 = dma.done.wait [#allocation3], 16  }
 0x105   :  { %176 = vsyncadd [#allocation3], 4294967280 }
 0x106   :  { %177 = dma.done.wait [#allocation5], 32  }
 0x107   :  { %178 = vsyncadd [#allocation5], 4294967264 }
 0x108   :  { %127 = sfence }
 0x109   :  { %128 = vsyncpa [#allocation3], 1 }
 0x10a   :  { %129 = vsyncpa [#allocation5], 1 }

// kernel: bayesian_conv2d_forward.3
= control target key start
LH: loop header
LB: loop body
LE: loop exit
PB: predicated region body
PF: predicated region fallthrough
CT: control target
= control target key end

     0   :  { %s765_s12 = smov 0   ;;  %s843_s0 = inlined_call_operand.vmem [shape: bf16[2,4,384], index: 0, kind: input, shape index: {}]   ;;  %s844_s1 = inlined_call_operand.vmem [shape: bf16[8,36], index: 1, kind: input, shape index: {}]   ;;  %s845_s2 = inlined_call_operand.vmem [shape: f32[8,1], index: 2, kind: input, shape index: {}]   ;;  %s846_s3 = inlined_call_operand.vmem [shape: f32[2,8,288], index: 3, kind: output, shape index: {}]  }
   0x1 LB: > { %s647_s13 = sadd.s32 4294967295, %s731_s12   ;;  %p651_p0 = scmp.ge.s32.totalorder %s731_s12, 1  ;;  %s731_s12 = sphi %s765_s12, %s13_s12  }
   0x2   : > { %p137_p1 = scmp.lt.s32.totalorder %s731_s12, 3 }
   0x4   : > { %p138_p2 = pnand %p651_p0, %p137_p1 }
   0x5   : > { %p161_p3 = scmp.lt.s32.totalorder (!%p138_p2), %s647_s13, 1  ;;  %v185_v0 = vlaneseq (!%p138_p2)  ;;  %v733_v1 = vmov (!%p138_p2), 1983009808   ;;  %s734_s18 = smov (!%p138_p2), 126   ;;  %vm192_vm0 = vcmask (!%p138_p2), 254976   ;;  %v738_v24 = vmov (!%p138_p2), 0.0  }
   0x6   : > { %141 = sbr.rel (%p138_p2) target bundleno = 398 (0x18e), region = 32  ;;  %v183_v2 = vunpack.c.l.s4 (!%p138_p2), %v733_v1  ;;  %s735_s19 = smov (!%p138_p2), 127   ;;  %673 = vmatprep.subr.bf16.mxu1 (!%p138_p2), %v738_v24  ;;  %vm743_vm1 = vmmov (!%p138_p2), 0   ;;  %v744_v42 = vmov (!%p138_p2), 0   ;;  %v447_v43 = vld [vmem:[%s845_s2] sm:$0xff] (!%p138_p2)  ;;  %vm224_vm2 = vcmask (!%p138_p2), 257026  }
   0x7   : > { %v186_v3 = vshrl.u32 (!%p138_p2), %v185_v0, 7  ;;  %s736_s20 = smov (!%p138_p2), 110   ;;  %s737_s21 = smov (!%p138_p2), 109   ;;  %679 = vmatprep.mubr.msk.bf16.mxu1 (!%p138_p2), %vm743_vm1, %v738_v24  ;;  %539 = vmatprep.mubr.bf16.mxu0 (!%p138_p2), %v744_v42  ;;  %vm217_vm3 = vcmask (!%p138_p2), 1043456   ;;  %vm250_vm4 = vcmask (!%p138_p2), 1031168   ;;  %vm219_vm5 = vcmask (!%p138_p2), 1039360  }
   0x8   : > { %v184_v4 = vunpack.c.0.s8 (!%p138_p2), %v183_v2  ;;  %s739_s22 = smov (!%p138_p2), 108   ;;  %s740_s23 = smov (!%p138_p2), 92   ;;  %705 = vset.pattern.permute.xlu0 (!%p138_p2), %v744_v42  ;;  %vm310_vm6 = vcmask (!%p138_p2), 891904   ;;  %vm280_vm7 = vcmask (!%p138_p2), 900096   ;;  %vm340_vm8 = vcmask (!%p138_p2), 883712  }
   0x9   : > { %s741_s24 = smov (!%p138_p2), 91   ;;  %s742_s25 = smov (!%p138_p2), 90   ;;  %vm370_vm9 = vcmask (!%p138_p2), 752640   ;;  %vm400_vm10 = vcmask (!%p138_p2), 744448   ;;  %vm430_vm11 = vcmask (!%p138_p2), 736256   ;;  %vm497_vm12 = vcmask (!%p138_p2), 1041408  }
   0xa   : > { %v776_v5 = vsub.s32 (!%p138_p2), %v184_v4, %v186_v3  ;;  %vm493_vm13 = vcmask (!%p138_p2), 293888   ;;  %vm590_vm14 = vcmask (!%p138_p2), 261120  }
   0xd   : > { %s848_s13 = smov (!%p161_p3, %s647_s13), 1 }
   0xe   : > { %s683_s14 = smul.u32 6, %s848_s13 }
   0xf   : > { %s684_s30 = smul.u32 24, %s848_s13 }
  0x10   : > { %s781_s17 = scalar_lea.vmem %s843_s0, %s683_s14 }
  0x11   : > { %v226_v6 = vld [vmem:[%s781_s17] sm:$0x3f]  ;;  %s170_s6 = scalar_lea.vmem %s846_s3, %s684_s30 }
  0x12   : > { %v194_v7 = vld [vmem:[%s781_s17] sm:$0x3f]  ;;  %v235_v9 = vrot.slane %v226_v6, %v776_v5  ;;  %v228_v12 = vcombine.high %v226_v6, %v226_v6 }
  0x13   : > { %v256_v8 = vld [vmem:[%s781_s17] sm:$0x3f]  ;;  %v210_v10 = vrot.slane %v194_v7, %v776_v5  ;;  %v196_v14 = vcombine.low %v194_v7, %v194_v7 }
  0x14   : > { %v286_v11 = vld [vmem:[%s781_s17] sm:$0x3f]  ;;  %243 = vrot.lane.b32.xlu1 %v235_v9, %s734_s18  ;;  %v272_v15 = vrot.slane %v256_v8, %v776_v5  ;;  %v242_v19 = vrot.slane %v228_v12, %v776_v5  ;;  %v258_v21 = vcombine.low %v256_v8, %v256_v8 }
  0x15   : > { %v172_v13 = vld [vmem:[%s781_s17] sm:$0x3f]  ;;  %213 = vrot.lane.b32.xlu0 %v210_v10, %s735_s19  ;;  %v295_v16 = vrot.slane %v286_v11, %v776_v5  ;;  %v288_v17 = vcombine.high %v286_v11, %v286_v11  ;;  %v203_v20 = vrot.slane %v196_v14, %v776_v5 }
  0x16   : > { %654 = vst.sshfl [vmem:[#allocation2] sm:$0xf pattern:$0x76325410] %v172_v13  ;;  %v174_v18 = vcombine.high %v172_v13, %v172_v13  ;;  %v316_v22 = vld [vmem:[%s781_s17] sm:$0x3f]  ;;  %v265_v26 = vrot.slane %v258_v21, %v776_v5 }
  0x17   : > { %v302_v25 = vrot.slane %v288_v17, %v776_v5  ;;  %v318_v27 = vcombine.low %v316_v22, %v316_v22  ;;  %v346_v28 = vld [vmem:[%s781_s17] sm:$0x3f]  ;;  %v332_v29 = vrot.slane %v316_v22, %v776_v5 }
  0x18   : > { %275 = vrot.lane.b32.xlu1 %v272_v15, %s736_s20  ;;  %v188_v23 = vrot.slane %v174_v18, %v776_v5  ;;  %v348_v31 = vcombine.high %v346_v28, %v346_v28  ;;  %v376_v32 = vld [vmem:[%s781_s17] sm:$0x3f]  ;;  %v355_v34 = vrot.slane %v346_v28, %v776_v5 }
  0x19   : > { %303 = vrot.lane.b32.xlu0 %v295_v16, %s737_s21  ;;  %v325_v30 = vrot.slane %v318_v27, %v776_v5  ;;  %v378_v35 = vcombine.low %v376_v32, %v376_v32  ;;  %v406_v36 = vld [vmem:[%s781_s17] sm:$0x3f]  ;;  %v392_v37 = vrot.slane %v376_v32, %v776_v5 }
  0x1a   : > { %193 = vst.msk [vmem:[#allocation2 + $0x8] sm:$0x3] %vm192_vm0, %v188_v23  ;;  %v362_v33 = vrot.slane %v348_v31, %v776_v5  ;;  %v408_v39 = vcombine.high %v406_v36, %v406_v36  ;;  %v415_v41 = vrot.slane %v406_v36, %v776_v5 }
  0x1b   : > { %v385_v38 = vrot.slane %v378_v35, %v776_v5 }
  0x1c   : > { %245 = vrot.lane.b32.xlu1 %v242_v19, %s734_s18  ;;  %v422_v40 = vrot.slane %v408_v39, %v776_v5 }
  0x1d   : > { %211 = vrot.lane.b32.xlu0 %v203_v20, %s735_s19 }
  0x20   : > { %305 = vrot.lane.b32.xlu1 %v302_v25, %s737_s21 }
  0x21   : > { %273 = vrot.lane.b32.xlu0 %v265_v26, %s736_s20 }
  0x24   : > { %335 = vrot.lane.b32.xlu1 %v332_v29, %s739_s22 }
  0x25   : > { %333 = vrot.lane.b32.xlu0 %v325_v30, %s739_s22 }
  0x28   : > { %365 = vrot.lane.b32.xlu1 %v362_v33, %s740_s23 }
  0x29   : > { %363 = vrot.lane.b32.xlu0 %v355_v34, %s740_s23 }
  0x2c   : > { %395 = vrot.lane.b32.xlu1 %v392_v37, %s741_s24 }
  0x2d   : > { %393 = vrot.lane.b32.xlu0 %v385_v38, %s741_s24 }
  0x30   : > { %425 = vrot.lane.b32.xlu1 %v422_v40, %s742_s25  ;;  %v436_v40 = vld [vmem:[%s844_s1] sm:$0xf] }
  0x31   : > { %423 = vrot.lane.b32.xlu0 %v415_v41, %s742_s25 }
  0x35   : > { %450 = vperm.xlu0 %705, %v447_v43  }
  0x86   : > { %v244_v44 = vpop.permute.xlu1 %243 }
  0x87   : > { %v214_v45 = vpop.permute.xlu0 %213  ;;  %v247_v50 = vrot.slane %v244_v44, 4 }
  0x88   : > { %225 = vst.msk [vmem:[#allocation2 + $0x8] sm:$0xc] %vm224_vm2, %v214_v45  ;;  %v216_v51 = vrot.slane %v214_v45, 4 }
  0x8a   : > { %v276_v46 = vpop.permute.xlu1 %275 }
  0x8b   : > { %v304_v47 = vpop.permute.xlu0 %303  ;;  %285 = vst.msk [vmem:[#allocation2 + $0x14] sm:$0xc] %vm224_vm2, %v276_v46  ;;  %v278_v60 = vrot.slane %v276_v46, 4 }
  0x8c   : > { %v307_v61 = vrot.slane %v304_v47, 4 }
  0x8e   : > { %v246_v48 = vpop.permute.xlu1 %245 }
  0x8f   : > { %v212_v49 = vpop.permute.xlu0 %211  ;;  %v248_v52 = vrot.slane %v246_v48, 4  ;;  %255 = vst.msk [vmem:[#allocation2 + $0x14] sm:$0x3] %vm192_vm0, %v246_v48 }
  0x90   : > { %v215_v53 = vrot.slane %v212_v49, 4 }
  0x91   : > { %v249_v54 = vsel %vm217_vm3, %v247_v50, %v248_v52 }
  0x92   : > { %v218_v55 = vsel %vm217_vm3, %v215_v53, %v216_v51  ;;  %v251_v56 = vsel %vm250_vm4, %v244_v44, %v249_v54  ;;  %v306_v58 = vpop.permute.xlu1 %305 }
  0x93   : > { %v220_v57 = vsel %vm219_vm5, %v212_v49, %v218_v55  ;;  %v274_v59 = vpop.permute.xlu0 %273  ;;  %254 = vst [vmem:[#allocation2 + $0xc] sm:$0x33] %v251_v56  ;;  %v308_v62 = vrot.slane %v306_v58, 4  ;;  %315 = vst.msk [vmem:[#allocation2 + $0x20] sm:$0x3] %vm192_vm0, %v306_v58 }
  0x94   : > { %223 = vst [vmem:[#allocation2] sm:$0xcc] %v220_v57  ;;  %v277_v63 = vrot.slane %v274_v59, 4 }
  0x95   : > { %v309_v0 = vsel %vm217_vm3, %v307_v61, %v308_v62 }
  0x96   : > { %v279_v1 = vsel %vm217_vm3, %v277_v63, %v278_v60  ;;  %v311_v2 = vsel %vm310_vm6, %v304_v47, %v309_v0  ;;  %v336_v4 = vpop.permute.xlu1 %335  ;;  %v715_v6 = vld [vmem:[#allocation2 + $0x8] ss:$12 sps:$4 sm:$0xff]  }
  0x97   : > { %v281_v3 = vsel %vm280_vm7, %v274_v59, %v279_v1  ;;  %v334_v5 = vpop.permute.xlu0 %333  ;;  %314 = vst [vmem:[#allocation2 + $0x18] sm:$0x33] %v311_v2  ;;  %v338_v7 = vrot.slane %v336_v4, 4  ;;  %345 = vst.msk [vmem:[#allocation2 + $0x20] sm:$0xc] %vm224_vm2, %v336_v4  ;;  %674 = vmatpush3.bf16.msra.mxu1 %v715_v6 }
  0x98   : > { %284 = vst [vmem:[#allocation2 + $0xc] sm:$0xcc] %v281_v3  ;;  %v337_v8 = vrot.slane %v334_v5, 4  ;;  %675 = vmatprep.subr.bf16.mxu1 %v738_v24 }
  0x9a   : > { %v339_v9 = vsel %vm217_vm3, %v337_v8, %v338_v7  ;;  %v366_v11 = vpop.permute.xlu1 %365 }
  0x9b   : > { %v341_v10 = vsel %vm340_vm8, %v334_v5, %v339_v9  ;;  %v364_v12 = vpop.permute.xlu0 %363  ;;  %v368_v13 = vrot.slane %v366_v11, 4  ;;  %375 = vst.msk [vmem:[#allocation2 + $0x2c] sm:$0x3] %vm192_vm0, %v366_v11  ;;  %v437_v16 = vld [vmem:[#allocation2] sm:$0xff] }
  0x9c   : > { %344 = vst [vmem:[#allocation2 + $0x18] sm:$0xcc] %v341_v10  ;;  %v367_v14 = vrot.slane %v364_v12, 4 }
  0x9e   : > { %v369_v15 = vsel %vm217_vm3, %v367_v14, %v368_v13  ;;  %v396_v18 = vpop.permute.xlu1 %395 }
  0x9f   : > { %v371_v17 = vsel %vm370_vm9, %v364_v12, %v369_v15  ;;  %v394_v19 = vpop.permute.xlu0 %393  ;;  %v439_v20 = vld [vmem:[#allocation2 + $0xc] sm:$0xff]  ;;  %v398_v22 = vrot.slane %v396_v18, 4  ;;  %405 = vst.msk [vmem:[#allocation2 + $0x2c] sm:$0xc] %vm224_vm2, %v396_v18 }
  0xa0   : > { %v716_v21 = vld [vmem:[#allocation2 + $0x4] ss:$12 sps:$4 sm:$0xff]   ;;  %374 = vst [vmem:[#allocation2 + $0x24] sm:$0x33] %v371_v17  ;;  %v397_v23 = vrot.slane %v394_v19, 4  ;;  %v655_v25 = vcombine.low %v437_v16, %v439_v20 }
  0xa1   : > { %507 = vmatprep.subr.bf16.mxu0 %v716_v21 }
  0xa2   : > { %v399_v26 = vsel %vm217_vm3, %v397_v23, %v398_v22  ;;  %508 = vmatpush1.bf16.msra.mxu0 %v655_v25  ;;  %v426_v28 = vpop.permute.xlu1 %425 }
  0xa3   : > { %v401_v27 = vsel %vm400_vm10, %v394_v19, %v399_v26  ;;  %v424_v29 = vpop.permute.xlu0 %423  ;;  %v428_v30 = vrot.slane %v426_v28, 4  ;;  %435 = vst.msk [vmem:[#allocation2 + $0x38] sm:$0x3] %vm192_vm0, %v426_v28 }
  0xa4   : > { %404 = vst [vmem:[#allocation2 + $0x24] sm:$0xcc] %v401_v27  ;;  %v427_v31 = vrot.slane %v424_v29, 4 }
  0xa6   : > { %v429_v32 = vsel %vm217_vm3, %v427_v31, %v428_v30  ;;  %v718_v34 = vld [vmem:[#allocation2 + $0x20] ss:$12 sps:$4 sm:$0xff]  }
  0xa7   : > { %v431_v33 = vsel %vm430_vm11, %v424_v29, %v429_v32  ;;  %676 = vmatpush3.bf16.msra.mxu1 %v718_v34 }
  0xa8   : > { %434 = vst [vmem:[#allocation2 + $0x30] sm:$0x33] %v431_v33  ;;  %677 = vmatprep.subr.bf16.mxu1 %v738_v24 }
  0xaa   : > { %v722_v37 = vld [vmem:[#allocation2 + $0x38] ss:$0 sps:$4 sm:$0x33]  }
  0xab   : > { %v719_v35 = vld [vmem:[#allocation2 + $0x1c] ss:$12 sps:$4 sm:$0xff]   ;;  %v721_v36 = vld [vmem:[#allocation2 + $0x18] ss:$12 sps:$4 sm:$0xff]   ;;  %v505_v38 = vsel %vm497_vm12, %v722_v37, 0 }
  0xac   : > { %509 = vmatprep.subr.bf16.mxu0 %v719_v35  ;;  %678 = vmatpush3.bf16.msra.mxu1 %v505_v38 }
  0xad   : > { %510 = vmatpush1.bf16.msra.mxu0 %v721_v36 }
  0xaf   : > { %v445_v39 = vld [vmem:[#allocation2 + $0x30] sm:$0x33]  ;;  %680 = vmatmul.mubr.msk.bf16.vlgmr.msra.gmra.mrb[0].mxu1 %vm493_vm13, %v436_v40 }
  0xb0   : > { %v662_v41 = vcombine.high %v445_v39, %v445_v39  ;;  %v661_v42 = vcombine.low %v445_v39, %v445_v39 }
  0xb2   : > { %664 = vmatprep.subr.msk.bf16.mxu0 %vm497_vm12, %v662_v41  ;;  %v499_v43 = vsel %vm497_vm12, %v661_v42, 0 }
  0xb3   : > { %512 = vmatpush1.bf16.msra.mxu0 %v499_v43 }
  0xb4   : > { %v451_v24 = vpop.permute.xlu0 %450 }
  0xb6   : > { %665 = vmatmul.mubr.msk.bf16.vlgmr.msra.gmra.mrb[0].mxu0 %vm493_vm13, %v436_v40 }
 0x182   : > { %v582_v44 = vpop.f32.mrb[0].mxu1 }
 0x183   : > { %v681_v45 = vpop.f32.mrb[1].mxu1  ;;  %v583_v46 = vadd.f32 %v582_v44, %v451_v24 }
 0x184   : > { %v585_v47 = vpop.f32.mrb[2].mxu1 }
 0x185   : > { %591 = vst.msk [vmem:[%s170_s6 + $0x10] sm:$0xff] %vm590_vm14, %v583_v46  ;;  %v682_v48 = vpop.f32.mrb[3].mxu1 }
 0x189   : > { %v541_v49 = vpop.f32.mrb[0].mxu0 }
 0x18a   : > { %v542_v50 = vadd.f32 %v541_v49, %v451_v24  ;;  %v543_v51 = vpop.f32.mrb[1].mxu0 }
 0x18b   : > { %v544_v52 = vadd.f32 %v543_v51, %v451_v24  ;;  %v545_v53 = vpop.f32.mrb[2].mxu0 }
 0x18c   : > { %588 = vst [vmem:[%s170_s6] sm:$0xff] %v542_v50  ;;  %v546_v54 = vpop.f32.mrb[3].mxu0 }
 0x18d   : > { %589 = vst [vmem:[%s170_s6 + $0x8] sm:$0xff] %v544_v52 }
 0x18e PF: > { %s13_s12 = sadd.s32 1, %s731_s12  }
 0x18f   : > { %p10_p4 = scmp.ge.s32.totalorder %s13_s12, 4  }
 0x191   :  { %12 = sbr.rel (!%p10_p4) target bundleno = 1 (0x1), region = 62 }

</bundles_post_ra>
